<compile_context>
chip_gen: v7x
topology: tpu7x:2x2x1
jax: 0.10.0
libtpu: 0.0.40
codegen_flags: <defaults>
</compile_context>

<pallas_src>
import functools

import jax
import jax.numpy as jnp
from jax.experimental import pallas as pl
from jax.experimental.pallas import tpu as pltpu

LANES = 128
SUBLANES = 8                       # f32 accumulator sublanes
MAX_BLOCK_ROWS = 4096              # 4096 * 128 * 4B = 2 MiB per f32 input tile
VMEM_LIMIT_BYTES = 48 * 1024 * 1024  # < v7x 64 MiB physical per-TC VMEM


def _sublane_multiple(dtype):
    # Native TPU tiling: (8,128) for 4B, (16,128) for 2B, (32,128) for 1B dtypes.
    return max(SUBLANES, 32 // jnp.dtype(dtype).itemsize)


def _num_tensorcores():
    # Among the targeted generations only v7x exposes 2 TensorCores per device;
    # v5e/v6e are single-TC, where a leading core axis would be pure waste.
    try:
        kind = jax.devices()[0].device_kind.lower()
    except Exception:
        return 1
    return 2 if "v7" in kind else 1


def _focal_loss_kernel(p_ref, t_ref, out_ref, *, gamma, total_rows, block_rows,
                       steps_per_core, assume_binary_targets):
    c = pl.program_id(0)
    j = pl.program_id(1)

    @pl.when(j == 0)
    def _():
        out_ref[...] = jnp.zeros_like(out_ref)

    p = p_ref[...].astype(jnp.float32)
    t = t_ref[...].astype(jnp.float32)

    if assume_binary_targets:
        # Fast path (1 EUP op/element instead of 3). Matches the exact path for
        # hard 0/1 targets except where the -100 log clamp fires (p == 0 or 1).
        # Keep default-off; do NOT use for soft / label-smoothed targets.
        pt = t * p + (1.0 - t) * (1.0 - p)
        bce = -jnp.maximum(jnp.log(pt), -100.0)
    else:
        # binary_cross_entropy with PyTorch's -100 log clamp, rearranged as
        #   s = log(1-p) + t*(log p - log(1-p));  bce = -s;  pt = exp(s)
        # (saves a multiply and a negation per element vs the naive form).
        log_p = jnp.maximum(jnp.log(p), -100.0)
        log_1mp = jnp.maximum(jnp.log(1.0 - p), -100.0)
        s = log_1mp + t * (log_p - log_1mp)
        bce = -s
        pt = jnp.exp(s)

    one_m_pt = 1.0 - pt
    g = float(gamma)
    if g == int(g) and g >= 0.0:
        # Integer gamma: repeated multiply on the VPU instead of pow
        # (pow lowers to exp(g*log(x)) = 2 extra EUP ops per element).
        gi = int(g)
        if gi == 0:
            w = jnp.ones_like(one_m_pt)
        else:
            w = one_m_pt
            for _ in range(gi - 1):
                w = w * one_m_pt
    else:
        w = one_m_pt ** jnp.float32(g)

    # alpha and 1/N are applied once on the reduced scalar in the wrapper.
    f_loss = w * bce

    # Number of valid (128-lane) rows left for this block; masking is at row
    # granularity (the sub-128 tail is handled outside the kernel).
    blk = c * steps_per_core + j
    limit_rows = total_rows - blk * block_rows

    @pl.when(limit_rows >= block_rows)
    def _():
        # Hot path: full interior block, no masking work at all.
        out_ref[0] += jnp.sum(
            f_loss.reshape(block_rows // SUBLANES, SUBLANES, LANES), axis=0)

    @pl.when(limit_rows < block_rows)
    def _():
        # Cold path: at most one boundary block per core (or a fully
        # out-of-range clamped block, which masks to all-zero).
        row_ids = jax.lax.broadcasted_iota(jnp.int32, (block_rows, LANES), 0)
        masked = jnp.where(row_ids < limit_rows, f_loss, 0.0)
        out_ref[0] += jnp.sum(
            masked.reshape(block_rows // SUBLANES, SUBLANES, LANES), axis=0)


def focal_loss(inputs, targets, *, alpha=0.25, gamma=2.0,
               assume_binary_targets=False, num_cores=None):
    """Focal loss with logits=False, reduce=True (mean). Returns a f32 scalar."""
    assert inputs.shape == targets.shape
    n = int(inputs.size)
    assert n > 0

    # Lane-dense view of the contiguous prefix; the <128-element tail is
    # reduced in plain JAX below (no full-array pad / extra HBM pass).
    p_flat = inputs.reshape(-1)
    t_flat = targets.reshape(-1)
    rows = n // LANES
    tail = n - rows * LANES

    total = jnp.float32(0.0)

    if rows > 0:
        p2 = p_flat[: rows * LANES].reshape(rows, LANES)
        t2 = t_flat[: rows * LANES].reshape(rows, LANES)

        if num_cores is None:
            num_cores = _num_tensorcores()
        num_cores = max(1, int(num_cores))

        # Round the tile to the dtype's native sublane multiple; clamp for
        # small inputs; cap at 2 MiB/f32 input tile (8 MiB double-buffered).
        mult = max(_sublane_multiple(p2.dtype), _sublane_multiple(t2.dtype))
        block_rows = min(MAX_BLOCK_ROWS, pl.cdiv(rows, mult) * mult)
        n_blocks = pl.cdiv(rows, block_rows)
        steps_per_core = pl.cdiv(n_blocks, num_cores)

        def row_block(c, j):
            # Clamp so boundary DMAs stay in range; the kernel masks any rows
            # past total_rows (including fully out-of-range clamped blocks).
            return (jnp.minimum(c * steps_per_core + j, n_blocks - 1), 0)

        kernel = functools.partial(
            _focal_loss_kernel,
            gamma=float(gamma),
            total_rows=rows,
            block_rows=block_rows,
            steps_per_core=steps_per_core,
            assume_binary_targets=bool(assume_binary_targets),
        )

        # Only a real multi-TC split (v7x) gets the core axis + CORE_PARALLEL;
        # plain "parallel" vs "arbitrary" barely changes codegen otherwise.
        if num_cores > 1:
            lead_sem = getattr(pltpu, "CORE_PARALLEL", "parallel")
        else:
            lead_sem = "parallel"

        out = pl.pallas_call(
            kernel,
            out_shape=jax.ShapeDtypeStruct((num_cores, SUBLANES, LANES),
                                           jnp.float32),
            grid_spec=pltpu.PrefetchScalarGridSpec(
                num_scalar_prefetch=0,
                grid=(num_cores, steps_per_core),
                in_specs=[
                    pl.BlockSpec((block_rows, LANES), row_block),
                    pl.BlockSpec((block_rows, LANES), row_block),
                ],
                out_specs=pl.BlockSpec((1, SUBLANES, LANES),
                                       lambda c, j: (c, 0, 0)),
            ),
            compiler_params=pltpu.CompilerParams(
                dimension_semantics=(lead_sem, "arbitrary"),
                vmem_limit_bytes=VMEM_LIMIT_BYTES,
            ),
        )(p2, t2)
        total = total + jnp.sum(out)

    if tail:
        # Tiny (<128 elements) ragged tail: exact reference math in plain JAX.
        p_t = p_flat[rows * LANES:].astype(jnp.float32)
        t_t = t_flat[rows * LANES:].astype(jnp.float32)
        lp = jnp.maximum(jnp.log(p_t), -100.0)
        l1p = jnp.maximum(jnp.log(1.0 - p_t), -100.0)
        s = l1p + t_t * (lp - l1p)
        bce = -s
        pt = jnp.exp(s)
        total = total + jnp.sum((1.0 - pt) ** jnp.float32(gamma) * bce)

    # alpha and the mean's 1/N folded into a single scalar scale.
    return total * jnp.float32(alpha / n)


def focal_loss_ref(inputs, targets, *, alpha=0.25, gamma=2.0):
    p = inputs.astype(jnp.float32)
    t = targets.astype(jnp.float32)
    bce = -(
        t * jnp.maximum(jnp.log(p), -100.0)
        + (1.0 - t) * jnp.maximum(jnp.log(1.0 - p), -100.0)
    )
    pt = jnp.exp(-bce)
    return jnp.mean(alpha * (1.0 - pt) ** gamma * bce)


if __name__ == "__main__":
    key = jax.random.PRNGKey(0)
    k1, k2, k3, k4, k5, k6 = jax.random.split(key, 6)

    # logits=False => inputs are probabilities in (0, 1); targets in [0, 1].
    x_shape = (2, 4, 16, 16)
    inputs = jax.nn.sigmoid(jax.random.normal(k1, x_shape, dtype=jnp.float32))
    targets = jax.random.bernoulli(k2, 0.5, x_shape).astype(jnp.float32)
    loss = focal_loss(inputs, targets)
    jax.block_until_ready(loss)
    ref = focal_loss_ref(inputs, targets)
    assert jnp.allclose(loss, ref, rtol=1e-5, atol=1e-6), (loss, ref)

    # Ragged element count (not a multiple of 128) exercises the JAX-side tail.
    y_shape = (3, 5, 7, 11)
    inputs2 = jax.nn.sigmoid(jax.random.normal(k3, y_shape, dtype=jnp.float32))
    targets2 = jax.random.bernoulli(k4, 0.5, y_shape).astype(jnp.float32)
    loss2 = focal_loss(inputs2, targets2)
    jax.block_until_ready(loss2)
    ref2 = focal_loss_ref(inputs2, targets2)
    assert jnp.allclose(loss2, ref2, rtol=1e-5, atol=1e-6), (loss2, ref2)

    # Multi-block case: exercises unmasked interior blocks + masked boundary.
    z_shape = (8, 4, 128, 130)   # 4160 rows of 128 lanes -> 2 grid steps
    inputs3 = jax.nn.sigmoid(jax.random.normal(k5, z_shape, dtype=jnp.float32))
    targets3 = jax.random.bernoulli(k6, 0.5, z_shape).astype(jnp.float32)
    loss3 = focal_loss(inputs3, targets3)
    jax.block_until_ready(loss3)
    ref3 = focal_loss_ref(inputs3, targets3)
    assert jnp.allclose(loss3, ref3, rtol=1e-4, atol=1e-6), (loss3, ref3)

    print("KERNEL_OK")
</pallas_src>

<mosaic_0001>
module attributes {stable_mosaic.version = 11 : i64} {
  func.func @_focal_loss_kernel(%arg0: i32, %arg1: i32, %arg2: memref<16x128xf32, #tpu.memory_space<vmem>>, %arg3: memref<16x128xf32, #tpu.memory_space<vmem>>, %arg4: memref<1x8x128xf32, #tpu.memory_space<vmem>>) attributes {dimension_semantics = [#tpu.dimension_semantics<parallel>, #tpu.dimension_semantics<arbitrary>], iteration_bounds = array<i64: 1, 1>, scalar_prefetch = 0 : i64, scratch_operands = 0 : i64, tpu.core_type = #tpu.core_type<tc>, window_params = [{transform_indices = @transform_0, window_bounds = array<i64: 16, 128>}, {transform_indices = @transform_1, window_bounds = array<i64: 16, 128>}, {transform_indices = @transform_2, window_bounds = array<i64: 1, 8, 128>}]} {
    %c0_i32 = arith.constant 0 : i32
    %0 = arith.cmpi eq, %arg1, %c0_i32 : i32
    %1 = arith.extui %0 : i1 to i32
    %c0_i32_0 = arith.constant 0 : i32
    %2 = arith.cmpi ne, %1, %c0_i32_0 : i32
    scf.if %2 {
      %cst_13 = arith.constant 0.000000e+00 : f32
      %33 = vector.broadcast %cst_13 : f32 to vector<1x8x128xf32>
      %c0_14 = arith.constant 0 : index
      %c0_15 = arith.constant 0 : index
      %c0_16 = arith.constant 0 : index
      %34 = vector.load %arg4[%c0_14, %c0_15, %c0_16] : memref<1x8x128xf32, #tpu.memory_space<vmem>>, vector<1x8x128xf32>
      tpu.vector_store %arg4[%c0_14, %c0_15, %c0_16], %33 {strides = array<i32>} : memref<1x8x128xf32, #tpu.memory_space<vmem>>, vector<1x8x128xf32>,
    } else {
    }
    %c0 = arith.constant 0 : index
    %c0_1 = arith.constant 0 : index
    %3 = vector.load %arg2[%c0, %c0_1] : memref<16x128xf32, #tpu.memory_space<vmem>>, vector<16x128xf32>
    %c0_2 = arith.constant 0 : index
    %c0_3 = arith.constant 0 : index
    %4 = vector.load %arg3[%c0_2, %c0_3] : memref<16x128xf32, #tpu.memory_space<vmem>>, vector<16x128xf32>
    %5 = math.log %3 : vector<16x128xf32>
    %cst = arith.constant -1.000000e+02 : f32
    %6 = vector.broadcast %cst : f32 to vector<16x128xf32>
    %7 = arith.maximumf %5, %6 : vector<16x128xf32>
    %cst_4 = arith.constant 1.000000e+00 : f32
    %8 = vector.broadcast %cst_4 : f32 to vector<16x128xf32>
    %9 = arith.subf %8, %3 : vector<16x128xf32>
    %10 = math.log %9 : vector<16x128xf32>
    %cst_5 = arith.constant -1.000000e+02 : f32
    %11 = vector.broadcast %cst_5 : f32 to vector<16x128xf32>
    %12 = arith.maximumf %10, %11 : vector<16x128xf32>
    %13 = arith.subf %7, %12 : vector<16x128xf32>
    %14 = arith.mulf %4, %13 : vector<16x128xf32>
    %15 = arith.addf %12, %14 : vector<16x128xf32>
    %cst_6 = arith.constant 0.000000e+00 : f32
    %16 = vector.broadcast %cst_6 : f32 to vector<16x128xf32>
    %17 = arith.subf %16, %15 : vector<16x128xf32>
    %18 = math.exp %15 : vector<16x128xf32>
    %cst_7 = arith.constant 1.000000e+00 : f32
    %19 = vector.broadcast %cst_7 : f32 to vector<16x128xf32>
    %20 = arith.subf %19, %18 : vector<16x128xf32>
    %21 = arith.mulf %20, %20 : vector<16x128xf32>
    %22 = arith.mulf %21, %17 : vector<16x128xf32>
    %c1_i32 = arith.constant 1 : i32
    %23 = arith.muli %arg0, %c1_i32 : i32
    %24 = arith.addi %23, %arg1 : i32
    %c16_i32 = arith.constant 16 : i32
    %25 = arith.muli %24, %c16_i32 : i32
    %c16_i32_8 = arith.constant 16 : i32
    %26 = arith.subi %c16_i32_8, %25 : i32
    %c16_i32_9 = arith.constant 16 : i32
    %27 = arith.cmpi sge, %26, %c16_i32_9 : i32
    %28 = arith.extui %27 : i1 to i32
    %c0_i32_10 = arith.constant 0 : i32
    %29 = arith.cmpi ne, %28, %c0_i32_10 : i32
    scf.if %29 {
      %c0_13 = arith.constant 0 : index
      %c0_14 = arith.constant 0 : index
      %c0_15 = arith.constant 0 : index
      %33 = vector.load %arg4[%c0_13, %c0_14, %c0_15] : memref<1x8x128xf32, #tpu.memory_space<vmem>>, vector<1x8x128xf32>
      %34 = vector.shape_cast %33 : vector<1x8x128xf32> to vector<8x128xf32>
      %35 = vector.shape_cast %22 : vector<16x128xf32> to vector<2x8x128xf32>
      %cst_16 = arith.constant dense<0.000000e+00> : vector<8x128xf32>
      %36 = vector.multi_reduction <add>, %35, %cst_16 [0] : vector<2x8x128xf32> to vector<8x128xf32>
      %37 = arith.addf %34, %36 : vector<8x128xf32>
      %c0_17 = arith.constant 0 : index
      %c0_18 = arith.constant 0 : index
      %c0_19 = arith.constant 0 : index
      %38 = vector.load %arg4[%c0_17, %c0_18, %c0_19] : memref<1x8x128xf32, #tpu.memory_space<vmem>>, vector<1x8x128xf32>
      %39 = vector.shape_cast %38 : vector<1x8x128xf32> to vector<8x128xf32>
      %40 = vector.shape_cast %37 : vector<8x128xf32> to vector<1x8x128xf32>
      tpu.vector_store %arg4[%c0_17, %c0_18, %c0_19], %40 {strides = array<i32>} : memref<1x8x128xf32, #tpu.memory_space<vmem>>, vector<1x8x128xf32>,
    } else {
    }
    %c16_i32_11 = arith.constant 16 : i32
    %30 = arith.cmpi slt, %26, %c16_i32_11 : i32
    %31 = arith.extui %30 : i1 to i32
    %c0_i32_12 = arith.constant 0 : i32
    %32 = arith.cmpi ne, %31, %c0_i32_12 : i32
    scf.if %32 {
      %33 = tpu.iota {dimensions = array<i32: 0>} : vector<16x128xi32>
      %34 = vector.broadcast %26 : i32 to vector<16x128xi32>
      %35 = arith.cmpi slt, %33, %34 : vector<16x128xi32>
      %cst_13 = arith.constant 0.000000e+00 : f32
      %36 = vector.broadcast %cst_13 : f32 to vector<16x128xf32>
      %37 = arith.select %35, %22, %36 : vector<16x128xi1>, vector<16x128xf32>
      %c0_14 = arith.constant 0 : index
      %c0_15 = arith.constant 0 : index
      %c0_16 = arith.constant 0 : index
      %38 = vector.load %arg4[%c0_14, %c0_15, %c0_16] : memref<1x8x128xf32, #tpu.memory_space<vmem>>, vector<1x8x128xf32>
      %39 = vector.shape_cast %38 : vector<1x8x128xf32> to vector<8x128xf32>
      %40 = vector.shape_cast %37 : vector<16x128xf32> to vector<2x8x128xf32>
      %cst_17 = arith.constant dense<0.000000e+00> : vector<8x128xf32>
      %41 = vector.multi_reduction <add>, %40, %cst_17 [0] : vector<2x8x128xf32> to vector<8x128xf32>
      %42 = arith.addf %39, %41 : vector<8x128xf32>
      %c0_18 = arith.constant 0 : index
      %c0_19 = arith.constant 0 : index
      %c0_20 = arith.constant 0 : index
      %43 = vector.load %arg4[%c0_18, %c0_19, %c0_20] : memref<1x8x128xf32, #tpu.memory_space<vmem>>, vector<1x8x128xf32>
      %44 = vector.shape_cast %43 : vector<1x8x128xf32> to vector<8x128xf32>
      %45 = vector.shape_cast %42 : vector<8x128xf32> to vector<1x8x128xf32>
      tpu.vector_store %arg4[%c0_18, %c0_19, %c0_20], %45 {strides = array<i32>} : memref<1x8x128xf32, #tpu.memory_space<vmem>>, vector<1x8x128xf32>,
    } else {
    }
    return
  }
  func.func @transform_0(%arg0: i32, %arg1: i32) -> (i32, i32) {
    %c1_i32 = arith.constant 1 : i32
    %0 = arith.muli %arg0, %c1_i32 : i32
    %1 = arith.addi %0, %arg1 : i32
    %c0_i32 = arith.constant 0 : i32
    %2 = arith.minsi %1, %c0_i32 : i32
    %c0_i32_0 = arith.constant 0 : i32
    %c0_i32_1 = arith.constant 0 : i32
    return %2, %c0_i32_0 : i32, i32
  }
  func.func @transform_1(%arg0: i32, %arg1: i32) -> (i32, i32) {
    %c1_i32 = arith.constant 1 : i32
    %0 = arith.muli %arg0, %c1_i32 : i32
    %1 = arith.addi %0, %arg1 : i32
    %c0_i32 = arith.constant 0 : i32
    %2 = arith.minsi %1, %c0_i32 : i32
    %c0_i32_0 = arith.constant 0 : i32
    %c0_i32_1 = arith.constant 0 : i32
    return %2, %c0_i32_0 : i32, i32
  }
  func.func @transform_2(%arg0: i32, %arg1: i32) -> (i32, i32, i32) {
    %c0_i32 = arith.constant 0 : i32
    %c0_i32_0 = arith.constant 0 : i32
    %c0_i32_1 = arith.constant 0 : i32
    return %arg0, %c0_i32, %c0_i32_0 : i32, i32, i32
  }
}

</mosaic_0001>

<bundles_post_ra>
// kernel: tpu_custom_call.1
= control target key start
LH: loop header
LB: loop body
LE: loop exit
PB: predicated region body
PF: predicated region fallthrough
CT: control target
= control target key end

     0   :  { %7 = vsyncpa [#allocation3], 0  ;;  %s294_s0 = inlined_call_operand.hbm [shape: f32[16,128], index: 0, kind: input, shape index: {}]   ;;  %s295_s1 = inlined_call_operand.hbm [shape: f32[16,128], index: 1, kind: input, shape index: {}]   ;;  %s296_s2 = inlined_call_operand.hbm [shape: f32[1,8,128], index: 2, kind: output, shape index: {}]  }
   0x1   :  { %8 = vsyncpa [#allocation6], 0 }
   0x2   :  { %9 = vsyncpa [#allocation4], 0  ;;  %s238_s9 = smov [#allocation2]   ;;  %s166_s13 = scalar_lea.hbm %s294_s0, 256 }
   0x3   :  { %s21_s10 = sshll.u32 %s238_s9, 4  ;;  %p167_p0 = scmp.ne.s32.totalorder %s294_s0, %s166_s13  ;;  %s22_s10 = int_to_ptr.vmem [resolvable:$true] %s21_s10 }
   0x4   :  { %p170_p1 = scmp.lt.u32.totalorder %s166_s13, %s294_s0 }
   0x6   :  { %p172_p2 = pnand %p170_p1, %p167_p0 }
   0x8   :  { %175 = shalt.err (!%p172_p2)
}
   0x9   :  { %s176_s18 = scalar_lea.vmem %s22_s10, 256  ;;  %p181_p4 = scmp.lt.s32.totalorder %s22_s10, %s22_s10 }
   0xa   :  { %p177_p3 = scmp.ne.s32.totalorder %s22_s10, %s176_s18  ;;  %p182_p5 = scmp.lt.s32.totalorder %s176_s18, %s176_s18 }
   0xc   :  { %p183_p6 = por %p182_p5, %p181_p4 }
   0xe   :  { %p184_p7 = pnand %p183_p6, %p177_p3 }
  0x10   :  { %187 = shalt.err (!%p184_p7)
}
  0x11   :  { %s239_s19 = smov 128   ;;  %s240_s20 = smov 8  }
  0x12   :  { %27 = dma.hbm_to_vmem [thread:$0]  %s294_s0, 256, %s22_s10, [#allocation3], %s239_s19, %s239_s19, %s240_s20  }
  0x13   :  { %s241_s23 = smov [#allocation5]   ;;  %s188_s27 = scalar_lea.hbm %s295_s1, 256 }
  0x14   :  { %s39_s24 = sshll.u32 %s241_s23, 4  ;;  %p189_p8 = scmp.ne.s32.totalorder %s295_s1, %s188_s27  ;;  %s40_s24 = int_to_ptr.vmem [resolvable:$true] %s39_s24 }
  0x15   :  { %p192_p9 = scmp.lt.u32.totalorder %s188_s27, %s295_s1 }
  0x17   :  { %p194_p10 = pnand %p192_p9, %p189_p8 }
  0x19   :  { %197 = shalt.err (!%p194_p10)
}
  0x1a   :  { %s198_s4 = scalar_lea.vmem %s40_s24, 256  ;;  %p203_p12 = scmp.lt.s32.totalorder %s40_s24, %s40_s24 }
  0x1b   :  { %p199_p11 = scmp.ne.s32.totalorder %s40_s24, %s198_s4  ;;  %p204_p13 = scmp.lt.s32.totalorder %s198_s4, %s198_s4 }
  0x1d   :  { %p205_p0 = por %p204_p13, %p203_p12 }
  0x1f   :  { %p206_p1 = pnand %p205_p0, %p199_p11 }
  0x21   :  { %209 = shalt.err (!%p206_p1)
}
  0x22   :  { %45 = dma.hbm_to_vmem [thread:$0]  %s295_s1, 256, %s40_s24, [#allocation6], %s239_s19, %s239_s19, %s240_s20  }
  0x23   :  { %232 = dma.done.wait [#allocation3], 256  }
  0x24   :  { %233 = vsyncadd [#allocation3], 4294967040 }
  0x25   :  { %234 = dma.done.wait [#allocation6], 256  }
  0x26   :  { %235 = vsyncadd [#allocation6], 4294967040  ;;  %v65_v0 = vld [vmem:[#allocation2] sm:$0xff]  ;;  %v66_v1 = vld [vmem:[#allocation2 + $0x8] sm:$0xff]  ;;  %s242_s1 = smov [#allocation7]  }
  0x27   :  { %154 = vlog2.f32 %v65_v0  ;;  %v75_v2 = vsub.f32 1.0, %v65_v0  ;;  %v76_v3 = vsub.f32 1.0, %v66_v1  ;;  %v67_v15 = vld [vmem:[#allocation5] sm:$0xff]  ;;  %v68_v17 = vld [vmem:[#allocation5 + $0x8] sm:$0xff]  ;;  %s134_s6 = sshll.u32 %s242_s1, 4  ;;  %s135_s6 = int_to_ptr.vmem [resolvable:$true] %s134_s6 }
  0x28   :  { %156 = vlog2.f32 %v66_v1  ;;  %s210_s7 = scalar_lea.vmem %s135_s6, 128  ;;  %p215_p3 = scmp.lt.s32.totalorder %s135_s6, %s135_s6 }
  0x29   :  { %158 = vlog2.f32 %v75_v2  ;;  %p211_p2 = scmp.ne.s32.totalorder %s135_s6, %s210_s7  ;;  %p216_p4 = scmp.lt.s32.totalorder %s210_s7, %s210_s7 }
  0x2a   :  { %160 = vlog2.f32 %v76_v3 }
  0x2b   :  { %p217_p5 = por %p216_p4, %p215_p3 }
  0x2d   :  { %p218_p6 = pnand %p217_p5, %p211_p2 }
  0x31   :  { %v155_v4 = vpop.eup %154 }
  0x32   :  { %v157_v5 = vpop.eup %156  ;;  %v70_v6 = vmul.f32 0.6931472, %v155_v4 }
  0x33   :  { %v159_v7 = vpop.eup %158  ;;  %v72_v8 = vmul.f32 0.6931472, %v157_v5 }
  0x34   :  { %v161_v9 = vpop.eup %160  ;;  %v73_v10 = vmax.f32 %v70_v6, -100.0  ;;  %v78_v11 = vmul.f32 0.6931472, %v159_v7 }
  0x35   :  { %v74_v12 = vmax.f32 %v72_v8, -100.0  ;;  %v80_v13 = vmul.f32 0.6931472, %v161_v9 }
  0x36   :  { %v81_v14 = vmax.f32 %v78_v11, -100.0 }
  0x37   :  { %v82_v16 = vmax.f32 %v80_v13, -100.0 }
  0x38   :  { %v83_v18 = vsub.f32 %v73_v10, %v81_v14 }
  0x39   :  { %v84_v19 = vsub.f32 %v74_v12, %v82_v16 }
  0x3a   :  { %v85_v20 = vmul.f32 %v83_v18, %v67_v15 }
  0x3b   :  { %v86_v21 = vmul.f32 %v84_v19, %v68_v17 }
  0x3c   :  { %v87_v22 = vadd.f32 %v85_v20, %v81_v14 }
  0x3d   :  { %v88_v23 = vadd.f32 %v86_v21, %v82_v16 }
  0x3e   :  { %v91_v24 = vmul.f32 1.442695, %v87_v22  ;;  %v89_v28 = vsub.f32 0.0, %v87_v22 }
  0x3f   :  { %v93_v25 = vmul.f32 1.442695, %v88_v23  ;;  %v90_v30 = vsub.f32 0.0, %v88_v23 }
  0x40   :  { %162 = vpow2.f32 %v91_v24 }
  0x41   :  { %164 = vpow2.f32 %v93_v25 }
  0x4a   :  { %v163_v26 = vpop.eup %162 }
  0x4b   :  { %v165_v27 = vpop.eup %164  ;;  %v95_v29 = vsub.f32 1.0, %v163_v26 }
  0x4c   :  { %v96_v31 = vsub.f32 1.0, %v165_v27 }
  0x4d   :  { %v97_v32 = vmul.f32 %v95_v29, %v95_v29 }
  0x4e   :  { %v98_v33 = vmul.f32 %v96_v31, %v96_v31 }
  0x4f   :  { %v99_v34 = vmul.f32 %v97_v32, %v89_v28 }
  0x50   :  { %v100_v35 = vmul.f32 %v98_v33, %v90_v30 }
  0x52   :  { %v109_v36 = vadd.f32 %v100_v35, %v99_v34 }
  0x54   :  { %111 = vst [vmem:[#allocation7] sm:$0xff] %v109_v36 }
  0x55   :  { %221 = shalt.err (!%p218_p6)
}
  0x56   :  { %s222_s10 = scalar_lea.hbm %s296_s2, 128 }
  0x57   :  { %p223_p7 = scmp.ne.s32.totalorder %s296_s2, %s222_s10  ;;  %p226_p8 = scmp.lt.u32.totalorder %s222_s10, %s296_s2 }
  0x59   :  { %p228_p9 = pnand %p226_p8, %p223_p7 }
  0x5b   :  { %231 = shalt.err (!%p228_p9)
}
  0x5c   :  { %137 = dma.vmem_to_hbm [thread:$0]  %s135_s6, 128, %s296_s2, [#allocation4]  }
  0x5d   :  { %236 = dma.done.wait [#allocation4], 128  }
  0x5e   :  { %237 = vsyncadd [#allocation4], 4294967168 }
  0x5f   :  { %141 = vsyncpa [#allocation3], 1 }
  0x60   :  { %142 = vsyncpa [#allocation6], 1 }
  0x61   :  { %143 = vsyncpa [#allocation4], 1 }

</bundles_post_ra>
